<compile_context>
chip_gen: v5e
topology: v5e:2x2
jax: 0.10.0
libtpu: 0.0.40
codegen_flags: <defaults>
</compile_context>

<pallas_src>
import jax
import jax.numpy as jnp
from jax.experimental import pallas as pl
from jax.experimental.pallas import tpu as pltpu

LANES = 128  # TPU lane width


def mynet_kernel(x_ref, w1_ref, b1_ref, w2_ref, b2_ref, w3_ref, b3_ref, out_ref):
    # fc1 + relu
    h1 = jnp.dot(x_ref[...], w1_ref[...], preferred_element_type=jnp.float32)
    h1 = jnp.maximum(h1 + b1_ref[...], 0.0)
    # fc2 + relu
    h2 = jnp.dot(h1, w2_ref[...], preferred_element_type=jnp.float32)
    h2 = jnp.maximum(h2 + b2_ref[...], 0.0)
    # fc3 (lane-padded to 128; padded columns carry a -1e30 bias so they drop out below)
    logits = jnp.dot(h2, w3_ref[...], preferred_element_type=jnp.float32) + b3_ref[...]
    # log_softmax over the feature axis (exp/log land on the otherwise-idle EUP slot)
    m = jnp.max(logits, axis=-1, keepdims=True)
    z = logits - m
    s = jnp.sum(jnp.exp(z), axis=-1, keepdims=True)
    out_ref[...] = (z - jnp.log(s)).astype(out_ref.dtype)


def mynet_forward(x, w1, b1, w2, b2, w3, b3, *, bm=256):
    B, in_size = x.shape
    h1_size = w1.shape[1]
    h2_size = w2.shape[1]
    out_size = w3.shape[1]

    # Lane-dense output: pad fc3 to a multiple of 128 lanes. Zero weights + a huge
    # negative bias in the padded columns keep the log_softmax reduction exact.
    out_pad = max(LANES, ((out_size + LANES - 1) // LANES) * LANES)
    w3p = jnp.zeros((h2_size, out_pad), w3.dtype).at[:, :out_size].set(w3)
    b3p = jnp.full((1, out_pad), -1e30, b3.dtype).at[:, :out_size].set(b3)

    # Pad the batch to a multiple of the batch tile (rows are independent).
    Bp = ((B + bm - 1) // bm) * bm
    xp = x if Bp == B else jnp.zeros((Bp, in_size), x.dtype).at[:B].set(x)

    grid = (Bp // bm,)

    flops = 2 * Bp * (in_size * h1_size + h1_size * h2_size + h2_size * out_pad)
    transcendentals = Bp * (out_pad + 1)  # exp per lane + one log per row
    bytes_accessed = (
        Bp * in_size * 4 + Bp * out_pad * 4
        + (in_size * h1_size + h1_size * h2_size + h2_size * out_pad) * 4
        + (h1_size + h2_size + out_pad) * 4
    )

    out = pl.pallas_call(
        mynet_kernel,
        out_shape=jax.ShapeDtypeStruct((Bp, out_pad), jnp.float32),
        grid=grid,
        in_specs=[
            pl.BlockSpec((bm, in_size), lambda i: (i, 0)),   # batch-tiled activations
            pl.BlockSpec(w1.shape, lambda i: (0, 0)),         # weights stay VMEM-resident
            pl.BlockSpec(b1.shape, lambda i: (0, 0)),
            pl.BlockSpec(w2.shape, lambda i: (0, 0)),
            pl.BlockSpec(b2.shape, lambda i: (0, 0)),
            pl.BlockSpec(w3p.shape, lambda i: (0, 0)),
            pl.BlockSpec(b3p.shape, lambda i: (0, 0)),
        ],
        out_specs=pl.BlockSpec((bm, out_pad), lambda i: (i, 0)),
        compiler_params=pltpu.CompilerParams(
            dimension_semantics=("parallel",),  # shards batch tiles across TCs on v7x
        ),
        cost_estimate=pl.CostEstimate(
            flops=flops,
            transcendentals=transcendentals,
            bytes_accessed=bytes_accessed,
        ),
    )(xp, w1, b1, w2, b2, w3p, b3p)

    return out[:B, :out_size]


def init_linear(key, in_features, out_features):
    # Deterministic init mimicking nn.Linear's uniform(-1/sqrt(in), 1/sqrt(in)).
    kw, kb = jax.random.split(key)
    bound = 1.0 / jnp.sqrt(jnp.float32(in_features))
    # Stored already transposed: (in, out)
    w = jax.random.uniform(kw, (in_features, out_features), jnp.float32, -bound, bound)
    b = jax.random.uniform(kb, (1, out_features), jnp.float32, -bound, bound)
    return w, b


if __name__ == "__main__":
    input_size, hidden1, hidden2, output_size = 32, 64, 48, 10
    batch = 512  # exercises the batch-tiled grid (bm=256 -> grid=(2,))

    key = jax.random.PRNGKey(0)
    kx, k1, k2, k3 = jax.random.split(key, 4)

    x = jax.random.normal(kx, (batch, input_size), jnp.float32)
    w1, b1 = init_linear(k1, input_size, hidden1)
    w2, b2 = init_linear(k2, hidden1, hidden2)
    w3, b3 = init_linear(k3, hidden2, output_size)

    out = mynet_forward(x, w1, b1, w2, b2, w3, b3, bm=256)
    jax.block_until_ready(out)

    # Pure-JAX reference check.
    h1 = jnp.maximum(x @ w1 + b1, 0.0)
    h2 = jnp.maximum(h1 @ w2 + b2, 0.0)
    logits = h2 @ w3 + b3
    ref = jax.nn.log_softmax(logits, axis=1)
    assert out.shape == (batch, output_size)
    assert jnp.allclose(out, ref, atol=1e-5, rtol=1e-5)

    print("KERNEL_OK")
</pallas_src>

<mosaic_0001>
module attributes {stable_mosaic.version = 11 : i64} {
  func.func @mynet_kernel(%arg0: i32, %arg1: memref<256x32xf32, #tpu.memory_space<vmem>>, %arg2: memref<32x64xf32, #tpu.memory_space<vmem>>, %arg3: memref<1x64xf32, #tpu.memory_space<vmem>>, %arg4: memref<64x48xf32, #tpu.memory_space<vmem>>, %arg5: memref<1x48xf32, #tpu.memory_space<vmem>>, %arg6: memref<48x128xf32, #tpu.memory_space<vmem>>, %arg7: memref<1x128xf32, #tpu.memory_space<vmem>>, %arg8: memref<256x128xf32, #tpu.memory_space<vmem>>) attributes {dimension_semantics = [#tpu.dimension_semantics<parallel>], iteration_bounds = array<i64: 2>, scalar_prefetch = 0 : i64, scratch_operands = 0 : i64, tpu.core_type = #tpu.core_type<tc>, window_params = [{transform_indices = @transform_0, window_bounds = array<i64: 256, 32>}, {pipeline_mode = #tpu.pipeline_mode<synchronous>, transform_indices = @transform_1, window_bounds = array<i64: 32, 64>}, {pipeline_mode = #tpu.pipeline_mode<synchronous>, transform_indices = @transform_2, window_bounds = array<i64: 1, 64>}, {pipeline_mode = #tpu.pipeline_mode<synchronous>, transform_indices = @transform_3, window_bounds = array<i64: 64, 48>}, {pipeline_mode = #tpu.pipeline_mode<synchronous>, transform_indices = @transform_4, window_bounds = array<i64: 1, 48>}, {pipeline_mode = #tpu.pipeline_mode<synchronous>, transform_indices = @transform_5, window_bounds = array<i64: 48, 128>}, {pipeline_mode = #tpu.pipeline_mode<synchronous>, transform_indices = @transform_6, window_bounds = array<i64: 1, 128>}, {transform_indices = @transform_7, window_bounds = array<i64: 256, 128>}]} {
    %c0 = arith.constant 0 : index
    %c0_0 = arith.constant 0 : index
    %0 = vector.load %arg1[%c0, %c0_0] : memref<256x32xf32, #tpu.memory_space<vmem>>, vector<256x32xf32>
    %c0_1 = arith.constant 0 : index
    %c0_2 = arith.constant 0 : index
    %1 = vector.load %arg2[%c0_1, %c0_2] : memref<32x64xf32, #tpu.memory_space<vmem>>, vector<32x64xf32>
    %cst = arith.constant dense<0.000000e+00> : vector<256x64xf32>
    %2 = tpu.matmul %0, %1, %cst {dimension_numbers = #tpu.dot_dimension_numbers<[1], [0], [0], [1], [0, 0, 1, 1], [], []>} : vector<256x32xf32>, vector<32x64xf32>, vector<256x64xf32> -> vector<256x64xf32>
    %c0_3 = arith.constant 0 : index
    %c0_4 = arith.constant 0 : index
    %3 = vector.load %arg3[%c0_3, %c0_4] : memref<1x64xf32, #tpu.memory_space<vmem>>, vector<1x64xf32>
    %4 = vector.broadcast %3 : vector<1x64xf32> to vector<256x64xf32>
    %5 = arith.addf %2, %4 : vector<256x64xf32>
    %cst_5 = arith.constant 0.000000e+00 : f32
    %6 = vector.broadcast %cst_5 : f32 to vector<256x64xf32>
    %7 = arith.maximumf %5, %6 : vector<256x64xf32>
    %c0_6 = arith.constant 0 : index
    %c0_7 = arith.constant 0 : index
    %8 = vector.load %arg4[%c0_6, %c0_7] : memref<64x48xf32, #tpu.memory_space<vmem>>, vector<64x48xf32>
    %cst_8 = arith.constant dense<0.000000e+00> : vector<256x48xf32>
    %9 = tpu.matmul %7, %8, %cst_8 {dimension_numbers = #tpu.dot_dimension_numbers<[1], [0], [0], [1], [0, 0, 1, 1], [], []>} : vector<256x64xf32>, vector<64x48xf32>, vector<256x48xf32> -> vector<256x48xf32>
    %c0_9 = arith.constant 0 : index
    %c0_10 = arith.constant 0 : index
    %10 = vector.load %arg5[%c0_9, %c0_10] : memref<1x48xf32, #tpu.memory_space<vmem>>, vector<1x48xf32>
    %11 = vector.broadcast %10 : vector<1x48xf32> to vector<256x48xf32>
    %12 = arith.addf %9, %11 : vector<256x48xf32>
    %cst_11 = arith.constant 0.000000e+00 : f32
    %13 = vector.broadcast %cst_11 : f32 to vector<256x48xf32>
    %14 = arith.maximumf %12, %13 : vector<256x48xf32>
    %c0_12 = arith.constant 0 : index
    %c0_13 = arith.constant 0 : index
    %15 = vector.load %arg6[%c0_12, %c0_13] : memref<48x128xf32, #tpu.memory_space<vmem>>, vector<48x128xf32>
    %cst_14 = arith.constant dense<0.000000e+00> : vector<256x128xf32>
    %16 = tpu.matmul %14, %15, %cst_14 {dimension_numbers = #tpu.dot_dimension_numbers<[1], [0], [0], [1], [0, 0, 1, 1], [], []>} : vector<256x48xf32>, vector<48x128xf32>, vector<256x128xf32> -> vector<256x128xf32>
    %c0_15 = arith.constant 0 : index
    %c0_16 = arith.constant 0 : index
    %17 = vector.load %arg7[%c0_15, %c0_16] : memref<1x128xf32, #tpu.memory_space<vmem>>, vector<1x128xf32>
    %18 = vector.broadcast %17 : vector<1x128xf32> to vector<256x128xf32>
    %19 = arith.addf %16, %18 : vector<256x128xf32>
    %cst_17 = arith.constant dense<0xFF800000> : vector<256xf32>
    %20 = vector.multi_reduction <maximumf>, %19, %cst_17 [1] : vector<256x128xf32> to vector<256xf32>
    %21 = vector.shape_cast %20 : vector<256xf32> to vector<256x1xf32>
    %22 = vector.broadcast %21 : vector<256x1xf32> to vector<256x128xf32>
    %23 = arith.subf %19, %22 : vector<256x128xf32>
    %24 = math.exp %23 : vector<256x128xf32>
    %cst_18 = arith.constant dense<0.000000e+00> : vector<256xf32>
    %25 = vector.multi_reduction <add>, %24, %cst_18 [1] : vector<256x128xf32> to vector<256xf32>
    %26 = vector.shape_cast %25 : vector<256xf32> to vector<256x1xf32>
    %27 = math.log %26 : vector<256x1xf32>
    %28 = vector.broadcast %27 : vector<256x1xf32> to vector<256x128xf32>
    %29 = arith.subf %23, %28 : vector<256x128xf32>
    %c0_19 = arith.constant 0 : index
    %c0_20 = arith.constant 0 : index
    %30 = vector.load %arg8[%c0_19, %c0_20] : memref<256x128xf32, #tpu.memory_space<vmem>>, vector<256x128xf32>
    tpu.vector_store %arg8[%c0_19, %c0_20], %29 {strides = array<i32>} : memref<256x128xf32, #tpu.memory_space<vmem>>, vector<256x128xf32>,
    return
  }
  func.func @transform_0(%arg0: i32) -> (i32, i32) {
    %c0_i32 = arith.constant 0 : i32
    %c0_i32_0 = arith.constant 0 : i32
    return %arg0, %c0_i32 : i32, i32
  }
  func.func @transform_1(%arg0: i32) -> (i32, i32) {
    %c0_i32 = arith.constant 0 : i32
    %c0_i32_0 = arith.constant 0 : i32
    %c0_i32_1 = arith.constant 0 : i32
    return %c0_i32, %c0_i32_0 : i32, i32
  }
  func.func @transform_2(%arg0: i32) -> (i32, i32) {
    %c0_i32 = arith.constant 0 : i32
    %c0_i32_0 = arith.constant 0 : i32
    %c0_i32_1 = arith.constant 0 : i32
    return %c0_i32, %c0_i32_0 : i32, i32
  }
  func.func @transform_3(%arg0: i32) -> (i32, i32) {
    %c0_i32 = arith.constant 0 : i32
    %c0_i32_0 = arith.constant 0 : i32
    %c0_i32_1 = arith.constant 0 : i32
    return %c0_i32, %c0_i32_0 : i32, i32
  }
  func.func @transform_4(%arg0: i32) -> (i32, i32) {
    %c0_i32 = arith.constant 0 : i32
    %c0_i32_0 = arith.constant 0 : i32
    %c0_i32_1 = arith.constant 0 : i32
    return %c0_i32, %c0_i32_0 : i32, i32
  }
  func.func @transform_5(%arg0: i32) -> (i32, i32) {
    %c0_i32 = arith.constant 0 : i32
    %c0_i32_0 = arith.constant 0 : i32
    %c0_i32_1 = arith.constant 0 : i32
    return %c0_i32, %c0_i32_0 : i32, i32
  }
  func.func @transform_6(%arg0: i32) -> (i32, i32) {
    %c0_i32 = arith.constant 0 : i32
    %c0_i32_0 = arith.constant 0 : i32
    %c0_i32_1 = arith.constant 0 : i32
    return %c0_i32, %c0_i32_0 : i32, i32
  }
  func.func @transform_7(%arg0: i32) -> (i32, i32) {
    %c0_i32 = arith.constant 0 : i32
    %c0_i32_0 = arith.constant 0 : i32
    return %arg0, %c0_i32 : i32, i32
  }
}

</mosaic_0001>

<bundles_post_ra>
// kernel: tpu_custom_call.1
= control target key start
LH: loop header
LB: loop body
LE: loop exit
PB: predicated region body
PF: predicated region fallthrough
CT: control target
= control target key end

     0   :  { %12 = vsyncpa [#allocation3], 0  ;;  %s2545_s0 = inlined_call_operand.vmem [shape: f32[512,32], index: 0, kind: input, shape index: {}]   ;;  %s2546_s1 = inlined_call_operand.vmem [shape: f32[32,64], index: 1, kind: input, shape index: {}]   ;;  %s2547_s2 = inlined_call_operand.vmem [shape: f32[1,64], index: 2, kind: input, shape index: {}]   ;;  %s2548_s3 = inlined_call_operand.vmem [shape: f32[64,48], index: 3, kind: input, shape index: {}]   ;;  %s2549_s4 = inlined_call_operand.vmem [shape: f32[1,48], index: 4, kind: input, shape index: {}]   ;;  %s2550_s5 = inlined_call_operand.vmem [shape: f32[48,128], index: 5, kind: input, shape index: {}]   ;;  %s2551_s6 = inlined_call_operand.vmem [shape: f32[1,128], index: 6, kind: input, shape index: {}]   ;;  %s2552_s7 = inlined_call_operand.hbm [shape: f32[512,128], index: 7, kind: output, shape index: {}]  }
   0x1   :  { %14 = vsyncpa [#allocation3 + $0x1], 0  ;;  %s1871_s24 = smov 0   ;;  %s1873_s25 = smov 0  }
   0x2   :  { %s1875_s26 = smov 0   ;;  %s1877_s27 = smov 0  }
   0x3 LB: > { %s1892_s28 = sadd.s32 4294967295, %s1827_s27   ;;  %s1466_s29 = sadd.s32 4294967294, %s1827_s27   ;;  %s1827_s27 = sphi %s1877_s27, %s2558_s27   ;;  %s1823_s26 = sphi %s1875_s26, %s2557_s26   ;;  %s1819_s25 = sphi %s1873_s25, %s2556_s25   ;;  %s1815_s24 = sphi %s1871_s24, %s2555_s24  }
   0x4   : > { %s1896_s30 = sadd.s32 1, %s1827_s27   ;;  %s179_s8 = sadd.s32 1, %s1823_s26 }
   0x5   : > { %s176_s9 = ssub.s32 %s1827_s27, %s1896_s30  ;;  %p189_p0 = scmp.ne.s32.totalorder %s1823_s26, %s1819_s25 }
   0x6   : > { %p177_p1 = scmp.eq.s32.totalorder %s176_s9, 0  ;;  %p190_p2 = scmp.eq.s32.totalorder %s1892_s28, 1 }
   0x7   : > { %p195_p3 = scmp.ne.s32.totalorder %s1819_s25, %s1815_s24  ;;  %p196_p4 = scmp.eq.s32.totalorder %s1466_s29, 1 }
   0x8   : > { %s1907_s10 = scalar_select %p177_p1, %s1823_s26, %s179_s8  }
   0x9   : > { %p1909_p5 = por %p190_p2, %p189_p0  ;;  %p1913_p6 = por %p196_p4, %p195_p3 }
   0xa   : > { %p1469_p7 = scmp.ge.s32.totalorder %s1827_s27, 1  ;;  %p241_p8 = scmp.lt.s32.totalorder %s1827_s27, 3 }
   0xc   : > { %p242_p9 = pnand %p1469_p7, %p241_p8 }
   0xd   : > { %s1471_s17 = sshll.u32 (!%p242_p9), %s1892_s28, 5  ;;  %s270_s19 = sand.u32 (!%p242_p9), 1, %s1819_s25  }
   0xe   : > { %245 = sbr.rel (%p242_p9) target bundleno = 933 (0x3a5), region = 48  ;;  %p274_p10 = scmp.lt.s32.totalorder (!%p242_p9), %s1471_s17, 63 }
   0xf   : > { %s1470_s20 = sshll.u32 (!%p242_p9), %s270_s19, 8  ;;  %s1574_s21 = sshll.u32 (!%p242_p9), %s1892_s28, 8 }
  0x10   : > { %s1400_s29 = scalar_lea.hbm (!%p242_p9), %s2552_s7, %s1574_s21  ;;  %s1389_s28 = scalar_lea.sflag (!%p242_p9), [#allocation3], %s270_s19 }
  0x11   : > { %s1403_s13 = sshll.u32 (!%p242_p9), %s1400_s29, 4  ;;  %s1785_s18 = scalar_lea.hbm (!%p242_p9), %s2552_s7, 512  ;;  %s1404_s13 = int_to_ptr.hbm [resolvable:$true] %s1403_s13 }
  0x12   : > { %s1779_s14 = sshra.s32 (!%p242_p9), %s1404_s13, 4  ;;  %s1780_s14 = int_to_ptr.hbm [resolvable:$true] %s1779_s14 }
  0x13   : > { %v315_v0 = vld [vmem:[%s2546_s1 + $0x18] sm:$0xff]  ;;  %v314_v1 = vld [vmem:[%s2546_s1 + $0x10] sm:$0xff]  ;;  %v313_v2 = vld [vmem:[%s2546_s1 + $0x8] sm:$0xff]  ;;  %s2560_s17 = smov (!%p274_p10, %s1471_s17), 63  ;;  %vm320_vm0 = vcmask 261120   ;;  %vm574_vm1 = vcmask 523264   ;;  %p1786_p0 = scmp.lt.s32.totalorder %s1780_s14, %s2552_s7 }
  0x14   : > { %429 = vmatpush.msra.mxu0 %v315_v0  ;;  %1575 = vmatpush.msra.mxu3 %v315_v0  ;;  %v312_v3 = vld [vmem:[%s2546_s1] sm:$0xff]  ;;  %s1472_s22 = sshll.u32 %s2560_s17, 3  ;;  %v569_v15 = vld [vmem:[%s2548_s3 + $0x38] sm:$0xff]  ;;  %v568_v16 = vld [vmem:[%s2548_s3 + $0x30] sm:$0xff]  ;;  %vm826_vm2 = vcmask 392192   ;;  %s1781_s15 = scalar_lea.hbm %s1780_s14, 256 }
  0x15   : > { %s1935_s8 = scalar_lea.vmem %s2545_s0, %s1472_s22  ;;  %679 = vmatpush.msra.mxu1 %v569_v15  ;;  %v567_v17 = vld [vmem:[%s2548_s3 + $0x28] sm:$0xff]  ;;  %v566_v19 = vld [vmem:[%s2548_s3 + $0x20] sm:$0xff]  ;;  %v565_v20 = vld [vmem:[%s2548_s3 + $0x18] sm:$0xff]  ;;  %p1782_p11 = scmp.ne.s32.totalorder %s1780_s14, %s1781_s15 }
  0x16   : > { %430 = vmatpush.msra.mxu0 %v314_v1  ;;  %1576 = vmatpush.msra.mxu3 %v314_v1  ;;  %v280_v4 = vld [vmem:[%s1935_s8] sm:$0xff]  ;;  %v281_v5 = vld [vmem:[%s1935_s8 + $0x8] sm:$0xff]  ;;  %v282_v6 = vld [vmem:[%s1935_s8 + $0x10] sm:$0xff]  ;;  %p1787_p1 = scmp.lt.s32.totalorder %s1785_s18, %s1781_s15 }
  0x17   : > { %v283_v7 = vld [vmem:[%s1935_s8 + $0x18] sm:$0xff]  ;;  %v284_v8 = vld [vmem:[%s1935_s8 + $0x20] sm:$0xff]  ;;  %v285_v9 = vld [vmem:[%s1935_s8 + $0x28] sm:$0xff]  ;;  %680 = vmatpush.msra.mxu1 %v568_v16  ;;  %p1783_p12 = pnand %p1782_p11, %p1909_p5 }
  0x18   : > { %431 = vmatpush.msra.mxu0 %v313_v2  ;;  %1577 = vmatpush.msra.mxu3 %v313_v2  ;;  %v286_v10 = vld [vmem:[%s1935_s8 + $0x30] sm:$0xff]  ;;  %v287_v11 = vld [vmem:[%s1935_s8 + $0x38] sm:$0xff]  ;;  %v288_v12 = vld [vmem:[%s1935_s8 + $0x40] sm:$0xff]  ;;  %p1788_p2 = por %p1787_p1, %p1786_p0 }
  0x19   : > { %v289_v13 = vld [vmem:[%s1935_s8 + $0x48] sm:$0xff]  ;;  %v290_v14 = vld [vmem:[%s1935_s8 + $0x50] sm:$0xff]  ;;  %v291_v18 = vld [vmem:[%s1935_s8 + $0x58] sm:$0xff]  ;;  %681 = vmatpush.msra.mxu1 %v567_v17  ;;  %p1784_p13 = pneg %p1783_p12 }
  0x1a   : > { %432 = vmatpush.msra.mxu0 %v312_v3  ;;  %1578 = vmatpush.msra.mxu3 %v312_v3  ;;  %v564_v21 = vld [vmem:[%s2548_s3 + $0x10] sm:$0xff]  ;;  %v292_v22 = vld [vmem:[%s1935_s8 + $0x60] sm:$0xff]  ;;  %v563_v23 = vld [vmem:[%s2548_s3 + $0x8] sm:$0xff] }
  0x1b   : > { %1473 = vmatmul.msk.f32.vlgmr.msra.gmra.mxu0 %vm320_vm0, %v280_v4  ;;  %682 = vmatpush.msra.mxu1 %v566_v19  ;;  %v562_v24 = vld [vmem:[%s2548_s3] sm:$0xff]  ;;  %v293_v25 = vld [vmem:[%s1935_s8 + $0x68] sm:$0xff]  ;;  %v294_v26 = vld [vmem:[%s1935_s8 + $0x70] sm:$0xff]  ;;  %p1789_p3 = pnand %p1788_p2, %p1784_p13 }
  0x1c   : > { %1579 = vmatpush.msrb.mxu3 %v569_v15  ;;  %v295_v27 = vld [vmem:[%s1935_s8 + $0x78] sm:$0xff]  ;;  %v1996_v28 = vld [vmem:[%s2547_s2] ss:$0 sm:$0xff]  ;;  %v297_v34 = vld [vmem:[%s1935_s8 + $0x88] sm:$0xff] }
  0x1d   : > { %683 = vmatpush.msra.mxu1 %v565_v20  ;;  %v296_v30 = vld [vmem:[%s1935_s8 + $0x80] sm:$0xff]  ;;  %v298_v38 = vld [vmem:[%s1935_s8 + $0x90] sm:$0xff]  ;;  %v299_v42 = vld [vmem:[%s1935_s8 + $0x98] sm:$0xff] }
  0x1e   : > { %1580 = vmatpush.msrb.mxu3 %v568_v16  ;;  %v300_v46 = vld [vmem:[%s1935_s8 + $0xa0] sm:$0xff]  ;;  %v305_v49 = vld [vmem:[%s1935_s8 + $0xc8] sm:$0xff]  ;;  %v306_v54 = vld [vmem:[%s1935_s8 + $0xd0] sm:$0xff] }
  0x1f   : > { %684 = vmatpush.msra.mxu1 %v564_v21  ;;  %1498 = vmatmul.msk.f32.vlgmr.msra.gmra.mxu3 %vm320_vm0, %v305_v49  ;;  %v301_v51 = vld [vmem:[%s1935_s8 + $0xa8] sm:$0xff]  ;;  %v302_v56 = vld [vmem:[%s1935_s8 + $0xb0] sm:$0xff]  ;;  %v307_v59 = vld [vmem:[%s1935_s8 + $0xd8] sm:$0xff] }
  0x20   : > { %1581 = vmatpush.msrb.mxu3 %v567_v17  ;;  %v303_v61 = vld [vmem:[%s1935_s8 + $0xb8] sm:$0xff]  ;;  %v308_v0 = vld [vmem:[%s1935_s8 + $0xe0] sm:$0xff]  ;;  %v821_v17 = vld [vmem:[%s2550_s5 + $0x28] sm:$0xff] }
  0x21   : > { %685 = vmatpush.msra.mxu1 %v563_v23  ;;  %v304_v2 = vld [vmem:[%s1935_s8 + $0xc0] sm:$0xff]  ;;  %933 = vmatpush.msra.mxu2 %v821_v17 }
  0x22   : > { %1582 = vmatpush.msrb.mxu3 %v566_v19  ;;  %v819_v19 = vld [vmem:[%s2550_s5 + $0x18] sm:$0xff] }
  0x23   : > { %1474 = vmatmul.msk.f32.gmra.mxu0 %vm320_vm0, %v281_v5  ;;  %686 = vmatpush.msra.mxu1 %v562_v24  ;;  %v309_v5 = vld [vmem:[%s1935_s8 + $0xe8] sm:$0xff] }
  0x24   : > { %1583 = vmatpush.msrb.mxu3 %v565_v20 }
  0x26   : > { %1584 = vmatpush.msrb.mxu3 %v564_v21 }
  0x27   : > { %1499 = vmatmul.msk.f32.gmra.mxu3 %vm320_vm0, %v306_v54 }
  0x28   : > { %1585 = vmatpush.msrb.mxu3 %v563_v23 }
  0x2a   : > { %1586 = vmatpush.msrb.mxu3 %v562_v24  ;;  %v817_v24 = vld [vmem:[%s2550_s5 + $0x8] sm:$0xff] }
  0x2b   : > { %1475 = vmatmul.msk.f32.gmra.mxu0 %vm320_vm0, %v282_v6 }
  0x2c   : > { %1587 = vmatpush.msra.mxu3 %v821_v17 }
  0x2f   : > { %1500 = vmatmul.msk.f32.gmra.mxu3 %vm320_vm0, %v307_v59 }
  0x33   : > { %1476 = vmatmul.msk.f32.gmra.mxu0 %vm320_vm0, %v283_v7 }
  0x37   : > { %1501 = vmatmul.msk.f32.gmra.mxu3 %vm320_vm0, %v308_v0 }
  0x3b   : > { %1477 = vmatmul.msk.f32.gmra.mxu0 %vm320_vm0, %v284_v8 }
  0x3f   : > { %1502 = vmatmul.msk.f32.gmra.mxu3 %vm320_vm0, %v309_v5 }
  0x43   : > { %1478 = vmatmul.msk.f32.gmra.mxu0 %vm320_vm0, %v285_v9  ;;  %v310_v9 = vld [vmem:[%s1935_s8 + $0xf0] sm:$0xff] }
  0x47   : > { %1503 = vmatmul.msk.f32.gmra.mxu3 %vm320_vm0, %v310_v9 }
  0x4b   : > { %1479 = vmatmul.msk.f32.gmra.mxu0 %vm320_vm0, %v286_v10 }
  0x53   : > { %1480 = vmatmul.msk.f32.gmra.mxu0 %vm320_vm0, %v287_v11 }
  0x5b   : > { %1481 = vmatmul.msk.f32.gmra.mxu0 %vm320_vm0, %v288_v12 }
  0x63   : > { %1482 = vmatmul.msk.f32.gmra.mxu0 %vm320_vm0, %v289_v13  ;;  %v311_v13 = vld [vmem:[%s1935_s8 + $0xf8] sm:$0xff]  ;;  %s2381_s8 = scalar_lea.vmem [#allocation2], %s1470_s20 }
  0x64   : > { %1504 = vmatmul.msk.f32.gmra.mxu3 %vm320_vm0, %v311_v13  ;;  %s1401_s9 = sshll.u32 %s2381_s8, 4  ;;  %s1402_s9 = int_to_ptr.vmem [resolvable:$true] %s1401_s9 }
  0x6b   : > { %1483 = vmatmul.msk.f32.gmra.mxu0 %vm320_vm0, %v290_v14 }
  0x73   : > { %1484 = vmatmul.msk.f32.gmra.mxu0 %vm320_vm0, %v291_v18  ;;  %v820_v18 = vld [vmem:[%s2550_s5 + $0x20] sm:$0xff] }
  0x74   : > { %934 = vmatpush.msra.mxu2 %v820_v18  ;;  %1588 = vmatpush.msra.mxu3 %v820_v18 }
  0x76   : > { %935 = vmatpush.msra.mxu2 %v819_v19  ;;  %1589 = vmatpush.msra.mxu3 %v819_v19 }
  0x7b   : > { %1485 = vmatmul.msk.f32.gmra.mxu0 %vm320_vm0, %v292_v22  ;;  %v818_v22 = vld [vmem:[%s2550_s5 + $0x10] sm:$0xff] }
  0x7c   : > { %936 = vmatpush.msra.mxu2 %v818_v22  ;;  %1590 = vmatpush.msra.mxu3 %v818_v22 }
  0x7e   : > { %937 = vmatpush.msra.mxu2 %v817_v24  ;;  %1591 = vmatpush.msra.mxu3 %v817_v24 }
  0x83   : > { %1486 = vmatmul.msk.f32.gmra.mxu0 %vm320_vm0, %v293_v25  ;;  %v816_v25 = vld [vmem:[%s2550_s5] sm:$0xff] }
  0x84   : > { %938 = vmatpush.msra.mxu2 %v816_v25  ;;  %1592 = vmatpush.msra.mxu3 %v816_v25 }
  0x8b   : > { %1487 = vmatmul.msk.f32.gmra.mxu0 %vm320_vm0, %v294_v26 }
  0x93   : > { %1488 = vmatmul.msk.f32.gmra.mxu0 %vm320_vm0, %v295_v27 }
  0x98   : > { %v434_v29 = vpop.f32.mrf.mxu0 }
  0x99   : > { %v435_v31 = vadd.f32 %v1996_v28, %v434_v29 }
  0x9b   : > { %v530_v32 = vmax.f32 %v435_v31, 0.0  ;;  %1489 = vmatmul.msk.f32.gmra.mxu0 %vm320_vm0, %v296_v30 }
  0x9d   : > { %1505 = vmatmul.msk.f32.vlgmr.msra.gmra.mxu1 %vm574_vm1, %v530_v32 }
  0xa0   : > { %v437_v33 = vpop.f32.mrf.mxu0 }
  0xa1   : > { %v438_v35 = vadd.f32 %v1996_v28, %v437_v33 }
  0xa3   : > { %v531_v36 = vmax.f32 %v438_v35, 0.0  ;;  %1490 = vmatmul.msk.f32.gmra.mxu0 %vm320_vm0, %v297_v34 }
  0xa5   : > { %1506 = vmatmul.msk.f32.gmra.mxu1 %vm574_vm1, %v531_v36  ;;  %v2083_v36 = vld [vmem:[%s2549_s4] ss:$0 sm:$0xff] }
  0xa8   : > { %v440_v37 = vpop.f32.mrf.mxu0 }
  0xa9   : > { %v441_v39 = vadd.f32 %v1996_v28, %v440_v37 }
  0xab   : > { %v532_v40 = vmax.f32 %v441_v39, 0.0  ;;  %1491 = vmatmul.msk.f32.gmra.mxu0 %vm320_vm0, %v298_v38 }
  0xad   : > { %1507 = vmatmul.msk.f32.gmra.mxu1 %vm574_vm1, %v532_v40 }
  0xb0   : > { %v443_v41 = vpop.f32.mrf.mxu0 }
  0xb1   : > { %v444_v43 = vadd.f32 %v1996_v28, %v443_v41 }
  0xb3   : > { %v533_v44 = vmax.f32 %v444_v43, 0.0  ;;  %1492 = vmatmul.msk.f32.gmra.mxu0 %vm320_vm0, %v299_v42 }
  0xb5   : > { %1508 = vmatmul.msk.f32.gmra.mxu1 %vm574_vm1, %v533_v44 }
  0xb8   : > { %v446_v45 = vpop.f32.mrf.mxu0 }
  0xb9   : > { %v447_v47 = vadd.f32 %v1996_v28, %v446_v45 }
  0xbb   : > { %v534_v48 = vmax.f32 %v447_v47, 0.0  ;;  %1493 = vmatmul.msk.f32.gmra.mxu0 %vm320_vm0, %v300_v46 }
  0xbd   : > { %1509 = vmatmul.msk.f32.gmra.mxu1 %vm574_vm1, %v534_v48 }
  0xc0   : > { %v449_v50 = vpop.f32.mrf.mxu0 }
  0xc1   : > { %v450_v52 = vadd.f32 %v1996_v28, %v449_v50 }
  0xc3   : > { %v535_v53 = vmax.f32 %v450_v52, 0.0  ;;  %1494 = vmatmul.msk.f32.gmra.mxu0 %vm320_vm0, %v301_v51 }
  0xc5   : > { %1510 = vmatmul.msk.f32.gmra.mxu1 %vm574_vm1, %v535_v53 }
  0xc8   : > { %v452_v55 = vpop.f32.mrf.mxu0 }
  0xc9   : > { %v453_v57 = vadd.f32 %v1996_v28, %v452_v55 }
  0xcb   : > { %v536_v58 = vmax.f32 %v453_v57, 0.0  ;;  %1495 = vmatmul.msk.f32.gmra.mxu0 %vm320_vm0, %v302_v56 }
  0xcd   : > { %1511 = vmatmul.msk.f32.gmra.mxu1 %vm574_vm1, %v536_v58 }
  0xd0   : > { %v455_v60 = vpop.f32.mrf.mxu0 }
  0xd1   : > { %v456_v62 = vadd.f32 %v1996_v28, %v455_v60 }
  0xd3   : > { %v537_v63 = vmax.f32 %v456_v62, 0.0  ;;  %1496 = vmatmul.msk.f32.gmra.mxu0 %vm320_vm0, %v303_v61 }
  0xd5   : > { %1512 = vmatmul.msk.f32.gmra.mxu1 %vm574_vm1, %v537_v63 }
  0xd8   : > { %v458_v1 = vpop.f32.mrf.mxu0 }
  0xd9   : > { %v459_v3 = vadd.f32 %v1996_v28, %v458_v1 }
  0xdb   : > { %v538_v4 = vmax.f32 %v459_v3, 0.0  ;;  %1497 = vmatmul.msk.f32.gmra.mxu0 %vm320_vm0, %v304_v2 }
  0xdd   : > { %1513 = vmatmul.msk.f32.gmra.mxu1 %vm574_vm1, %v538_v4 }
  0xe0   : > { %v461_v6 = vpop.f32.mrf.mxu0 }
  0xe1   : > { %v462_v7 = vadd.f32 %v1996_v28, %v461_v6 }
  0xe3   : > { %v539_v8 = vmax.f32 %v462_v7, 0.0 }
  0xe5   : > { %1514 = vmatmul.msk.f32.gmra.mxu1 %vm574_vm1, %v539_v8 }
  0xe8   : > { %v464_v10 = vpop.f32.mrf.mxu0 }
  0xe9   : > { %v465_v11 = vadd.f32 %v1996_v28, %v464_v10 }
  0xeb   : > { %v540_v12 = vmax.f32 %v465_v11, 0.0 }
  0xed   : > { %1515 = vmatmul.msk.f32.gmra.mxu1 %vm574_vm1, %v540_v12 }
  0xf0   : > { %v467_v14 = vpop.f32.mrf.mxu0 }
  0xf1   : > { %v468_v15 = vadd.f32 %v1996_v28, %v467_v14 }
  0xf3   : > { %v541_v16 = vmax.f32 %v468_v15, 0.0  ;;  %v509_v15 = vpop.f32.mrf.mxu3 }
  0xf5   : > { %1516 = vmatmul.msk.f32.gmra.mxu1 %vm574_vm1, %v541_v16 }
  0xf8   : > { %v470_v20 = vpop.f32.mrf.mxu0 }
  0xf9   : > { %v471_v21 = vadd.f32 %v1996_v28, %v470_v20 }
  0xfb   : > { %v542_v23 = vmax.f32 %v471_v21, 0.0 }
  0xfd   : > { %1517 = vmatmul.msk.f32.gmra.mxu1 %vm574_vm1, %v542_v23  ;;  %v512_v23 = vpop.f32.mrf.mxu3 }
 0x100   : > { %v473_v26 = vpop.f32.mrf.mxu0 }
 0x101   : > { %v474_v27 = vadd.f32 %v1996_v28, %v473_v26 }
 0x103   : > { %v543_v29 = vmax.f32 %v474_v27, 0.0 }
 0x105   : > { %1518 = vmatmul.msk.f32.gmra.mxu1 %vm574_vm1, %v543_v29 }
 0x108   : > { %v476_v30 = vpop.f32.mrf.mxu0 }
 0x109   : > { %v477_v31 = vadd.f32 %v1996_v28, %v476_v30  ;;  %v510_v30 = vadd.f32 %v1996_v28, %v509_v15 }
 0x10b   : > { %v544_v32 = vmax.f32 %v477_v31, 0.0  ;;  %v555_v31 = vmax.f32 %v510_v30, 0.0 }
 0x10d   : > { %1519 = vmatmul.msk.f32.gmra.mxu1 %vm574_vm1, %v544_v32 }
 0x110   : > { %v479_v33 = vpop.f32.mrf.mxu0 }
 0x111   : > { %v480_v34 = vadd.f32 %v1996_v28, %v479_v33  ;;  %v515_v33 = vpop.f32.mrf.mxu3 }
 0x113   : > { %v545_v35 = vmax.f32 %v480_v34, 0.0 }
 0x115   : > { %1520 = vmatmul.msk.f32.gmra.mxu1 %vm574_vm1, %v545_v35 }
 0x118   : > { %v482_v37 = vpop.f32.mrf.mxu0 }
 0x119   : > { %v483_v38 = vadd.f32 %v1996_v28, %v482_v37  ;;  %v513_v37 = vadd.f32 %v1996_v28, %v512_v23 }
 0x11a   : > { %v688_v39 = vpop.f32.mrf.mxu1 }
 0x11b   : > { %v546_v40 = vmax.f32 %v483_v38, 0.0  ;;  %v689_v41 = vadd.f32 %v2083_v36, %v688_v39  ;;  %v556_v38 = vmax.f32 %v513_v37, 0.0 }
 0x11d   : > { %v784_v42 = vmax.f32 %v689_v41, 0.0  ;;  %1521 = vmatmul.msk.f32.gmra.mxu1 %vm574_vm1, %v546_v40  ;;  %v518_v41 = vpop.f32.mrf.mxu3 }
 0x11f   : > { %1537 = vmatmul.msk.f32.vlgmr.msra.gmra.mxu2 %vm826_vm2, %v784_v42 }
 0x120   : > { %v485_v43 = vpop.f32.mrf.mxu0 }
 0x121   : > { %v486_v44 = vadd.f32 %v1996_v28, %v485_v43  ;;  %v516_v43 = vadd.f32 %v1996_v28, %v515_v33 }
 0x122   : > { %v691_v45 = vpop.f32.mrf.mxu1 }
 0x123   : > { %v547_v46 = vmax.f32 %v486_v44, 0.0  ;;  %v692_v47 = vadd.f32 %v2083_v36, %v691_v45  ;;  %v557_v44 = vmax.f32 %v516_v43, 0.0 }
 0x125   : > { %v785_v48 = vmax.f32 %v692_v47, 0.0  ;;  %1522 = vmatmul.msk.f32.gmra.mxu1 %vm574_vm1, %v547_v46 }
 0x127   : > { %1538 = vmatmul.msk.f32.gmra.mxu2 %vm826_vm2, %v785_v48  ;;  %v519_v48 = vadd.f32 %v1996_v28, %v518_v41 }
 0x128   : > { %v488_v49 = vpop.f32.mrf.mxu0 }
 0x129   : > { %v489_v50 = vadd.f32 %v1996_v28, %v488_v49  ;;  %v521_v49 = vpop.f32.mrf.mxu3 }
 0x12a   : > { %v694_v51 = vpop.f32.mrf.mxu1 }
 0x12b   : > { %v548_v52 = vmax.f32 %v489_v50, 0.0  ;;  %v695_v53 = vadd.f32 %v2083_v36, %v694_v51  ;;  %v558_v50 = vmax.f32 %v519_v48, 0.0 }
 0x12d   : > { %v786_v54 = vmax.f32 %v695_v53, 0.0  ;;  %1523 = vmatmul.msk.f32.gmra.mxu1 %vm574_vm1, %v548_v52 }
 0x12f   : > { %1539 = vmatmul.msk.f32.gmra.mxu2 %vm826_vm2, %v786_v54  ;;  %v522_v54 = vadd.f32 %v1996_v28, %v521_v49 }
 0x130   : > { %v491_v55 = vpop.f32.mrf.mxu0 }
 0x131   : > { %v492_v56 = vadd.f32 %v1996_v28, %v491_v55  ;;  %v524_v55 = vpop.f32.mrf.mxu3 }
 0x132   : > { %v697_v57 = vpop.f32.mrf.mxu1 }
 0x133   : > { %v549_v58 = vmax.f32 %v492_v56, 0.0  ;;  %v698_v59 = vadd.f32 %v2083_v36, %v697_v57  ;;  %v559_v56 = vmax.f32 %v522_v54, 0.0 }
 0x135   : > { %v787_v60 = vmax.f32 %v698_v59, 0.0  ;;  %1524 = vmatmul.msk.f32.gmra.mxu1 %vm574_vm1, %v549_v58 }
 0x137   : > { %1540 = vmatmul.msk.f32.gmra.mxu2 %vm826_vm2, %v787_v60  ;;  %v525_v60 = vadd.f32 %v1996_v28, %v524_v55 }
 0x138   : > { %v494_v61 = vpop.f32.mrf.mxu0 }
 0x139   : > { %v495_v62 = vadd.f32 %v1996_v28, %v494_v61  ;;  %v560_v61 = vmax.f32 %v525_v60, 0.0 }
 0x13a   : > { %v700_v63 = vpop.f32.mrf.mxu1 }
 0x13b   : > { %v550_v0 = vmax.f32 %v495_v62, 0.0  ;;  %v701_v1 = vadd.f32 %v2083_v36, %v700_v63  ;;  %v527_v63 = vpop.f32.mrf.mxu3 }
 0x13d   : > { %v788_v2 = vmax.f32 %v701_v1, 0.0  ;;  %1525 = vmatmul.msk.f32.gmra.mxu1 %vm574_vm1, %v550_v0 }
 0x13f   : > { %1541 = vmatmul.msk.f32.gmra.mxu2 %vm826_vm2, %v788_v2  ;;  %v528_v2 = vadd.f32 %v1996_v28, %v527_v63 }
 0x140   : > { %v497_v3 = vpop.f32.mrf.mxu0 }
 0x141   : > { %v498_v4 = vadd.f32 %v1996_v28, %v497_v3  ;;  %v561_v3 = vmax.f32 %v528_v2, 0.0 }
 0x142   : > { %v703_v5 = vpop.f32.mrf.mxu1 }
 0x143   : > { %v551_v6 = vmax.f32 %v498_v4, 0.0  ;;  %v704_v7 = vadd.f32 %v2083_v36, %v703_v5 }
 0x145   : > { %v789_v8 = vmax.f32 %v704_v7, 0.0  ;;  %1526 = vmatmul.msk.f32.gmra.mxu1 %vm574_vm1, %v551_v6 }
 0x147   : > { %1542 = vmatmul.msk.f32.gmra.mxu2 %vm826_vm2, %v789_v8 }
 0x148   : > { %v500_v9 = vpop.f32.mrf.mxu0 }
 0x149   : > { %v501_v10 = vadd.f32 %v1996_v28, %v500_v9 }
 0x14a   : > { %v706_v11 = vpop.f32.mrf.mxu1 }
 0x14b   : > { %v552_v12 = vmax.f32 %v501_v10, 0.0  ;;  %v707_v13 = vadd.f32 %v2083_v36, %v706_v11 }
 0x14d   : > { %v790_v14 = vmax.f32 %v707_v13, 0.0  ;;  %1527 = vmatmul.msk.f32.gmra.mxu1 %vm574_vm1, %v552_v12 }
 0x14f   : > { %1543 = vmatmul.msk.f32.gmra.mxu2 %vm826_vm2, %v790_v14 }
 0x150   : > { %v503_v16 = vpop.f32.mrf.mxu0 }
 0x151   : > { %v504_v17 = vadd.f32 %v1996_v28, %v503_v16 }
 0x152   : > { %v709_v18 = vpop.f32.mrf.mxu1 }
 0x153   : > { %v553_v19 = vmax.f32 %v504_v17, 0.0  ;;  %v710_v20 = vadd.f32 %v2083_v36, %v709_v18 }
 0x155   : > { %v791_v21 = vmax.f32 %v710_v20, 0.0  ;;  %1528 = vmatmul.msk.f32.gmra.mxu1 %vm574_vm1, %v553_v19 }
 0x157   : > { %1544 = vmatmul.msk.f32.gmra.mxu2 %vm826_vm2, %v791_v21 }
 0x158   : > { %v506_v22 = vpop.f32.mrf.mxu0 }
 0x159   : > { %v507_v24 = vadd.f32 %v1996_v28, %v506_v22  ;;  %v2154_v28 = vld [vmem:[%s2551_s6] ss:$0 sm:$0xff] }
 0x15a   : > { %v712_v25 = vpop.f32.mrf.mxu1 }
 0x15b   : > { %v554_v26 = vmax.f32 %v507_v24, 0.0  ;;  %v713_v27 = vadd.f32 %v2083_v36, %v712_v25 }
 0x15d   : > { %v792_v29 = vmax.f32 %v713_v27, 0.0  ;;  %1529 = vmatmul.msk.f32.vlgmr.msrb.gmra.mxu3 %vm574_vm1, %v554_v26 }
 0x15f   : > { %1545 = vmatmul.msk.f32.gmra.mxu2 %vm826_vm2, %v792_v29 }
 0x162   : > { %v715_v32 = vpop.f32.mrf.mxu1 }
 0x163   : > { %v716_v34 = vadd.f32 %v2083_v36, %v715_v32 }
 0x165   : > { %v793_v35 = vmax.f32 %v716_v34, 0.0  ;;  %1530 = vmatmul.msk.f32.gmra.mxu3 %vm574_vm1, %v555_v31 }
 0x167   : > { %1546 = vmatmul.msk.f32.gmra.mxu2 %vm826_vm2, %v793_v35 }
 0x16a   : > { %v718_v39 = vpop.f32.mrf.mxu1 }
 0x16b   : > { %v719_v40 = vadd.f32 %v2083_v36, %v718_v39 }
 0x16d   : > { %v794_v42 = vmax.f32 %v719_v40, 0.0  ;;  %1531 = vmatmul.msk.f32.gmra.mxu3 %vm574_vm1, %v556_v38 }
 0x16f   : > { %1547 = vmatmul.msk.f32.gmra.mxu2 %vm826_vm2, %v794_v42 }
 0x172   : > { %v721_v45 = vpop.f32.mrf.mxu1 }
 0x173   : > { %v722_v46 = vadd.f32 %v2083_v36, %v721_v45 }
 0x175   : > { %v795_v47 = vmax.f32 %v722_v46, 0.0  ;;  %1532 = vmatmul.msk.f32.gmra.mxu3 %vm574_vm1, %v557_v44 }
 0x177   : > { %1548 = vmatmul.msk.f32.gmra.mxu2 %vm826_vm2, %v795_v47 }
 0x17a   : > { %v724_v51 = vpop.f32.mrf.mxu1 }
 0x17b   : > { %v725_v52 = vadd.f32 %v2083_v36, %v724_v51 }
 0x17d   : > { %v796_v53 = vmax.f32 %v725_v52, 0.0  ;;  %1533 = vmatmul.msk.f32.gmra.mxu3 %vm574_vm1, %v558_v50 }
 0x17f   : > { %1549 = vmatmul.msk.f32.gmra.mxu2 %vm826_vm2, %v796_v53 }
 0x182   : > { %v727_v57 = vpop.f32.mrf.mxu1 }
 0x183   : > { %v728_v58 = vadd.f32 %v2083_v36, %v727_v57 }
 0x185   : > { %v797_v59 = vmax.f32 %v728_v58, 0.0  ;;  %1534 = vmatmul.msk.f32.gmra.mxu3 %vm574_vm1, %v559_v56 }
 0x187   : > { %1550 = vmatmul.msk.f32.gmra.mxu2 %vm826_vm2, %v797_v59 }
 0x18a   : > { %v730_v62 = vpop.f32.mrf.mxu1 }
 0x18b   : > { %v731_v0 = vadd.f32 %v2083_v36, %v730_v62 }
 0x18d   : > { %v798_v1 = vmax.f32 %v731_v0, 0.0  ;;  %1535 = vmatmul.msk.f32.gmra.mxu3 %vm574_vm1, %v560_v61 }
 0x18f   : > { %1551 = vmatmul.msk.f32.gmra.mxu2 %vm826_vm2, %v798_v1 }
 0x192   : > { %v733_v4 = vpop.f32.mrf.mxu1 }
 0x193   : > { %v734_v5 = vadd.f32 %v2083_v36, %v733_v4 }
 0x195   : > { %v799_v6 = vmax.f32 %v734_v5, 0.0  ;;  %1536 = vmatmul.msk.f32.gmra.mxu3 %vm574_vm1, %v561_v3 }
 0x197   : > { %1552 = vmatmul.msk.f32.gmra.mxu2 %vm826_vm2, %v799_v6 }
 0x19a   : > { %v736_v7 = vpop.f32.mrf.mxu1 }
 0x19b   : > { %v737_v8 = vadd.f32 %v2083_v36, %v736_v7 }
 0x19d   : > { %v800_v9 = vmax.f32 %v737_v8, 0.0 }
 0x19f   : > { %1553 = vmatmul.msk.f32.gmra.mxu2 %vm826_vm2, %v800_v9 }
 0x1a2   : > { %v739_v10 = vpop.f32.mrf.mxu1  ;;  %v940_v11 = vpop.f32.mrf.mxu2 }
 0x1a3   : > { %v740_v12 = vadd.f32 %v2083_v36, %v739_v10  ;;  %v2158_v13 = vadd.f32 %v2154_v28, %v940_v11 }
 0x1a5   : > { %v801_v14 = vmax.f32 %v740_v12, 0.0  ;;  %1036 = vmax.xlane.f32.xlu0 %v2158_v13 }
 0x1a7   : > { %1554 = vmatmul.msk.f32.gmra.mxu2 %vm826_vm2, %v801_v14 }
 0x1aa   : > { %v742_v15 = vpop.f32.mrf.mxu1  ;;  %v943_v16 = vpop.f32.mrf.mxu2 }
 0x1ab   : > { %v743_v17 = vadd.f32 %v2083_v36, %v742_v15  ;;  %v2164_v18 = vadd.f32 %v2154_v28, %v943_v16 }
 0x1ad   : > { %v802_v19 = vmax.f32 %v743_v17, 0.0  ;;  %1038 = vmax.xlane.f32.xlu0 %v2164_v18 }
 0x1af   : > { %1555 = vmatmul.msk.f32.gmra.mxu2 %vm826_vm2, %v802_v19 }
 0x1b2   : > { %v745_v20 = vpop.f32.mrf.mxu1  ;;  %v946_v21 = vpop.f32.mrf.mxu2 }
 0x1b3   : > { %v746_v22 = vadd.f32 %v2083_v36, %v745_v20  ;;  %v2170_v23 = vadd.f32 %v2154_v28, %v946_v21 }
 0x1b5   : > { %v803_v24 = vmax.f32 %v746_v22, 0.0  ;;  %1040 = vmax.xlane.f32.xlu1 %v2170_v23 }
 0x1b7   : > { %1556 = vmatmul.msk.f32.gmra.mxu2 %vm826_vm2, %v803_v24 }
 0x1ba   : > { %v748_v25 = vpop.f32.mrf.mxu1  ;;  %v949_v26 = vpop.f32.mrf.mxu2 }
 0x1bb   : > { %v749_v27 = vadd.f32 %v2083_v36, %v748_v25  ;;  %v2176_v29 = vadd.f32 %v2154_v28, %v949_v26 }
 0x1bd   : > { %v804_v30 = vmax.f32 %v749_v27, 0.0  ;;  %1042 = vmax.xlane.f32.xlu1 %v2176_v29 }
 0x1bf   : > { %1557 = vmatmul.msk.f32.gmra.mxu2 %vm826_vm2, %v804_v30 }
 0x1c2   : > { %v751_v31 = vpop.f32.mrf.mxu1  ;;  %v952_v32 = vpop.f32.mrf.mxu2 }
 0x1c3   : > { %v752_v33 = vadd.f32 %v2083_v36, %v751_v31  ;;  %v2182_v34 = vadd.f32 %v2154_v28, %v952_v32 }
 0x1c5   : > { %v805_v35 = vmax.f32 %v752_v33, 0.0  ;;  %1044 = vmax.xlane.f32.xlu2 %v2182_v34 }
 0x1c7   : > { %1558 = vmatmul.msk.f32.gmra.mxu2 %vm826_vm2, %v805_v35 }
 0x1ca   : > { %v754_v37 = vpop.f32.mrf.mxu1  ;;  %v955_v38 = vpop.f32.mrf.mxu2 }
 0x1cb   : > { %v755_v39 = vadd.f32 %v2083_v36, %v754_v37  ;;  %v2188_v40 = vadd.f32 %v2154_v28, %v955_v38 }
 0x1cd   : > { %v806_v41 = vmax.f32 %v755_v39, 0.0  ;;  %1046 = vmax.xlane.f32.xlu2 %v2188_v40 }
 0x1cf   : > { %1559 = vmatmul.msk.f32.gmra.mxu2 %vm826_vm2, %v806_v41 }
 0x1d2   : > { %v757_v42 = vpop.f32.mrf.mxu1  ;;  %v958_v43 = vpop.f32.mrf.mxu2 }
 0x1d3   : > { %v758_v44 = vadd.f32 %v2083_v36, %v757_v42  ;;  %v2194_v45 = vadd.f32 %v2154_v28, %v958_v43 }
 0x1d5   : > { %v807_v46 = vmax.f32 %v758_v44, 0.0  ;;  %1048 = vmax.xlane.f32.xlu0 %v2194_v45 }
 0x1d7   : > { %1560 = vmatmul.msk.f32.gmra.mxu2 %vm826_vm2, %v807_v46 }
 0x1da   : > { %v961_v47 = vpop.f32.mrf.mxu2 }
 0x1db   : > { %v2199_v48 = vadd.f32 %v2154_v28, %v961_v47 }
 0x1dd   : > { %1050 = vmax.xlane.f32.xlu1 %v2199_v48 }
 0x1e0   : > { %v760_v49 = vpop.f32.mrf.mxu3 }
 0x1e1   : > { %v761_v50 = vadd.f32 %v2083_v36, %v760_v49 }
 0x1e2   : > { %v964_v51 = vpop.f32.mrf.mxu2 }
 0x1e3   : > { %v808_v52 = vmax.f32 %v761_v50, 0.0  ;;  %v2204_v53 = vadd.f32 %v2154_v28, %v964_v51 }
 0x1e5   : > { %1561 = vmatmul.msk.f32.vlgmr.msra.gmra.mxu3 %vm826_vm2, %v808_v52  ;;  %1052 = vmax.xlane.f32.xlu2 %v2204_v53 }
 0x1e8   : > { %v763_v54 = vpop.f32.mrf.mxu3 }
 0x1e9   : > { %v764_v55 = vadd.f32 %v2083_v36, %v763_v54 }
 0x1ea   : > { %v967_v56 = vpop.f32.mrf.mxu2 }
 0x1eb   : > { %v809_v57 = vmax.f32 %v764_v55, 0.0  ;;  %v2210_v58 = vadd.f32 %v2154_v28, %v967_v56 }
 0x1ed   : > { %1562 = vmatmul.msk.f32.gmra.mxu3 %vm826_vm2, %v809_v57  ;;  %1054 = vmax.xlane.f32.xlu0 %v2210_v58 }
 0x1f0   : > { %v766_v59 = vpop.f32.mrf.mxu3 }
 0x1f1   : > { %v767_v60 = vadd.f32 %v2083_v36, %v766_v59 }
 0x1f2   : > { %v970_v61 = vpop.f32.mrf.mxu2 }
 0x1f3   : > { %v810_v62 = vmax.f32 %v767_v60, 0.0  ;;  %v2216_v63 = vadd.f32 %v2154_v28, %v970_v61 }
 0x1f5   : > { %1563 = vmatmul.msk.f32.gmra.mxu3 %vm826_vm2, %v810_v62  ;;  %1056 = vmax.xlane.f32.xlu1 %v2216_v63 }
 0x1f8   : > { %v769_v0 = vpop.f32.mrf.mxu3 }
 0x1f9   : > { %v770_v1 = vadd.f32 %v2083_v36, %v769_v0 }
 0x1fa   : > { %v973_v2 = vpop.f32.mrf.mxu2 }
 0x1fb   : > { %v811_v3 = vmax.f32 %v770_v1, 0.0  ;;  %v2222_v4 = vadd.f32 %v2154_v28, %v973_v2 }
 0x1fd   : > { %1564 = vmatmul.msk.f32.gmra.mxu3 %vm826_vm2, %v811_v3  ;;  %1058 = vmax.xlane.f32.xlu2 %v2222_v4 }
 0x200   : > { %v772_v5 = vpop.f32.mrf.mxu3 }
 0x201   : > { %v773_v6 = vadd.f32 %v2083_v36, %v772_v5 }
 0x202   : > { %v976_v7 = vpop.f32.mrf.mxu2 }
 0x203   : > { %v812_v8 = vmax.f32 %v773_v6, 0.0  ;;  %v2228_v9 = vadd.f32 %v2154_v28, %v976_v7 }
 0x205   : > { %1565 = vmatmul.msk.f32.gmra.mxu3 %vm826_vm2, %v812_v8  ;;  %1060 = vmax.xlane.f32.xlu0 %v2228_v9 }
 0x208   : > { %v775_v10 = vpop.f32.mrf.mxu3 }
 0x209   : > { %v776_v11 = vadd.f32 %v2083_v36, %v775_v10 }
 0x20a   : > { %v979_v12 = vpop.f32.mrf.mxu2 }
 0x20b   : > { %v813_v14 = vmax.f32 %v776_v11, 0.0  ;;  %v2234_v15 = vadd.f32 %v2154_v28, %v979_v12 }
 0x20d   : > { %1566 = vmatmul.msk.f32.gmra.mxu3 %vm826_vm2, %v813_v14  ;;  %1062 = vmax.xlane.f32.xlu1 %v2234_v15 }
 0x210   : > { %v778_v16 = vpop.f32.mrf.mxu3 }
 0x211   : > { %v779_v17 = vadd.f32 %v2083_v36, %v778_v16 }
 0x212   : > { %v982_v19 = vpop.f32.mrf.mxu2 }
 0x213   : > { %v814_v20 = vmax.f32 %v779_v17, 0.0  ;;  %v2240_v21 = vadd.f32 %v2154_v28, %v982_v19 }
 0x215   : > { %1567 = vmatmul.msk.f32.gmra.mxu3 %vm826_vm2, %v814_v20  ;;  %1064 = vmax.xlane.f32.xlu2 %v2240_v21 }
 0x218   : > { %v781_v22 = vpop.f32.mrf.mxu3  ;;  %v1037_v24 = vpop.xlane.xlu0 %1036 }
 0x219   : > { %v782_v25 = vadd.f32 %v2083_v36, %v781_v22  ;;  %v2246_v26 = vsub.f32 %v2158_v13, %v1037_v24 }
 0x21a   : > { %v985_v27 = vpop.f32.mrf.mxu2 }
 0x21b   : > { %v815_v30 = vmax.f32 %v782_v25, 0.0  ;;  %v1132_v31 = vmul.f32 1.442695, %v2246_v26  ;;  %v2250_v32 = vadd.f32 %v2154_v28, %v985_v27 }
 0x21d   : > { %1637 = vpow2.f32 %v1132_v31  ;;  %1568 = vmatmul.msk.f32.gmra.mxu3 %vm826_vm2, %v815_v30  ;;  %1066 = vmax.xlane.f32.xlu0 %v2250_v32 }
 0x220   : > { %v1039_v33 = vpop.xlane.xlu0 %1038 }
 0x221   : > { %v2255_v35 = vsub.f32 %v2164_v18, %v1039_v33 }
 0x222   : > { %v988_v36 = vpop.f32.mrf.mxu2 }
 0x223   : > { %v1638_v37 = vpop.eup %1637  ;;  %v1134_v13 = vmul.f32 1.442695, %v2255_v35  ;;  %v2259_v38 = vadd.f32 %v2154_v28, %v988_v36 }
 0x224   : > { %1196 = vadd.xlane.f32.xlu2 %v1638_v37 }
 0x225   : > { %1639 = vpow2.f32 %v1134_v13  ;;  %1068 = vmax.xlane.f32.xlu1 %v2259_v38 }
 0x228   : > { %v1041_v39 = vpop.xlane.xlu1 %1040 }
 0x229   : > { %v2263_v41 = vsub.f32 %v2170_v23, %v1041_v39 }
 0x22a   : > { %v991_v42 = vpop.f32.mrf.mxu2 }
 0x22b   : > { %v1640_v43 = vpop.eup %1639  ;;  %v1136_v18 = vmul.f32 1.442695, %v2263_v41  ;;  %v2267_v44 = vadd.f32 %v2154_v28, %v991_v42 }
 0x22c   : > { %1198 = vadd.xlane.f32.xlu0 %v1640_v43 }
 0x22d   : > { %1641 = vpow2.f32 %v1136_v18  ;;  %1070 = vmax.xlane.f32.xlu2 %v2267_v44 }
 0x230   : > { %v1043_v46 = vpop.xlane.xlu1 %1042 }
 0x231   : > { %v2271_v47 = vsub.f32 %v2176_v29, %v1043_v46 }
 0x232   : > { %v994_v49 = vpop.f32.mrf.mxu2 }
 0x233   : > { %v1642_v50 = vpop.eup %1641  ;;  %v1138_v23 = vmul.f32 1.442695, %v2271_v47  ;;  %v2275_v51 = vadd.f32 %v2154_v28, %v994_v49 }
 0x234   : > { %1200 = vadd.xlane.f32.xlu1 %v1642_v50 }
 0x235   : > { %1643 = vpow2.f32 %v1138_v23  ;;  %1072 = vmax.xlane.f32.xlu0 %v2275_v51 }
 0x238   : > { %v1045_v52 = vpop.xlane.xlu2 %1044 }
 0x239   : > { %v2279_v54 = vsub.f32 %v2182_v34, %v1045_v52 }
 0x23a   : > { %v997_v55 = vpop.f32.mrf.mxu2 }
 0x23b   : > { %v1644_v56 = vpop.eup %1643  ;;  %v1140_v29 = vmul.f32 1.442695, %v2279_v54  ;;  %v2283_v57 = vadd.f32 %v2154_v28, %v997_v55 }
 0x23c   : > { %1202 = vadd.xlane.f32.xlu2 %v1644_v56 }
 0x23d   : > { %1645 = vpow2.f32 %v1140_v29  ;;  %1074 = vmax.xlane.f32.xlu1 %v2283_v57 }
 0x240   : > { %v1047_v59 = vpop.xlane.xlu2 %1046 }
 0x241   : > { %v2287_v60 = vsub.f32 %v2188_v40, %v1047_v59 }
 0x242   : > { %v1000_v61 = vpop.f32.mrf.mxu2 }
 0x243   : > { %v1646_v62 = vpop.eup %1645  ;;  %v1142_v34 = vmul.f32 1.442695, %v2287_v60  ;;  %v2291_v0 = vadd.f32 %v2154_v28, %v1000_v61 }
 0x244   : > { %1204 = vadd.xlane.f32.xlu0 %v1646_v62 }
 0x245   : > { %1647 = vpow2.f32 %v1142_v34  ;;  %1076 = vmax.xlane.f32.xlu2 %v2291_v0 }
 0x248   : > { %v1049_v1 = vpop.xlane.xlu0 %1048 }
 0x249   : > { %v2295_v2 = vsub.f32 %v2194_v45, %v1049_v1 }
 0x24a   : > { %v1003_v3 = vpop.f32.mrf.mxu2 }
 0x24b   : > { %v1648_v5 = vpop.eup %1647  ;;  %v1144_v40 = vmul.f32 1.442695, %v2295_v2  ;;  %v2299_v6 = vadd.f32 %v2154_v28, %v1003_v3 }
 0x24c   : > { %1206 = vadd.xlane.f32.xlu1 %v1648_v5 }
 0x24d   : > { %1649 = vpow2.f32 %v1144_v40  ;;  %1078 = vmax.xlane.f32.xlu0 %v2299_v6 }
 0x250   : > { %v1051_v7 = vpop.xlane.xlu1 %1050 }
 0x251   : > { %v2303_v8 = vsub.f32 %v2199_v48, %v1051_v7 }
 0x252   : > { %v1006_v10 = vpop.f32.mrf.mxu2 }
 0x253   : > { %v1650_v11 = vpop.eup %1649  ;;  %v1146_v45 = vmul.f32 1.442695, %v2303_v8  ;;  %v2307_v12 = vadd.f32 %v2154_v28, %v1006_v10 }
 0x254   : > { %1208 = vadd.xlane.f32.xlu2 %v1650_v11 }
 0x255   : > { %1651 = vpow2.f32 %v1146_v45  ;;  %1080 = vmax.xlane.f32.xlu1 %v2307_v12 }
 0x258   : > { %v1053_v14 = vpop.xlane.xlu2 %1052 }
 0x259   : > { %v2311_v16 = vsub.f32 %v2204_v53, %v1053_v14 }
 0x25a   : > { %v1009_v17 = vpop.f32.mrf.mxu2 }
 0x25b   : > { %v1652_v19 = vpop.eup %1651  ;;  %v1148_v48 = vmul.f32 1.442695, %v2311_v16  ;;  %v2315_v20 = vadd.f32 %v2154_v28, %v1009_v17 }
 0x25c   : > { %1210 = vadd.xlane.f32.xlu0 %v1652_v19 }
 0x25d   : > { %1653 = vpow2.f32 %v1148_v48  ;;  %1082 = vmax.xlane.f32.xlu2 %v2315_v20 }
 0x260   : > { %v1055_v22 = vpop.xlane.xlu0 %1054 }
 0x261   : > { %v2319_v24 = vsub.f32 %v2210_v58, %v1055_v22 }
 0x263   : > { %v1654_v25 = vpop.eup %1653  ;;  %v1150_v27 = vmul.f32 1.442695, %v2319_v24 }
 0x264   : > { %1212 = vadd.xlane.f32.xlu1 %v1654_v25 }
 0x265   : > { %1655 = vpow2.f32 %v1150_v27 }
 0x268   : > { %v1012_v53 = vpop.f32.mrf.mxu3  ;;  %v1057_v30 = vpop.xlane.xlu1 %1056 }
 0x269   : > { %v2323_v31 = vadd.f32 %v2154_v28, %v1012_v53  ;;  %v2326_v33 = vsub.f32 %v2216_v63, %v1057_v30 }
 0x26b   : > { %v1656_v36 = vpop.eup %1655  ;;  %v1152_v37 = vmul.f32 1.442695, %v2326_v33  ;;  %1084 = vmax.xlane.f32.xlu0 %v2323_v31 }
 0x26c   : > { %1214 = vadd.xlane.f32.xlu2 %v1656_v36 }
 0x26d   : > { %1657 = vpow2.f32 %v1152_v37 }
 0x270   : > { %v1015_v58 = vpop.f32.mrf.mxu3  ;;  %v1059_v46 = vpop.xlane.xlu2 %1058 }
 0x271   : > { %v2331_v13 = vadd.f32 %v2154_v28, %v1015_v58 }
 0x273   : > { %v1658_v39 = vpop.eup %1657  ;;  %1086 = vmax.xlane.f32.xlu1 %v2331_v13 }
 0x274   : > { %1216 = vadd.xlane.f32.xlu0 %v1658_v39 }
 0x278   : > { %v1018_v42 = vpop.f32.mrf.mxu3  ;;  %v1061_v50 = vpop.xlane.xlu0 %1060 }
 0x279   : > { %v2335_v43 = vadd.f32 %v2154_v28, %v1018_v42  ;;  %v2347_v52 = vsub.f32 %v2228_v9, %v1061_v50 }
 0x27b   : > { %1088 = vmax.xlane.f32.xlu2 %v2335_v43  ;;  %v1156_v56 = vmul.f32 1.442695, %v2347_v52 }
 0x27d   : > { %1659 = vpow2.f32 %v1156_v56 }
 0x280   : > { %v1021_v63 = vpop.f32.mrf.mxu3  ;;  %v1063_v59 = vpop.xlane.xlu1 %1062 }
 0x281   : > { %v2339_v18 = vadd.f32 %v2154_v28, %v1021_v63  ;;  %v2355_v34 = vsub.f32 %v2234_v15, %v1063_v59  ;;  %v2367_v15 = vsub.f32 %v2222_v4, %v1059_v46 }
 0x283   : > { %1090 = vmax.xlane.f32.xlu0 %v2339_v18  ;;  %v1158_v3 = vmul.f32 1.442695, %v2355_v34  ;;  %v1660_v11 = vpop.eup %1659  ;;  %v1154_v14 = vmul.f32 1.442695, %v2367_v15 }
 0x288   : > { %v1024_v49 = vpop.f32.mrf.mxu3  ;;  %v1065_v55 = vpop.xlane.xlu2 %1064 }
 0x289   : > { %v2343_v23 = vadd.f32 %v2154_v28, %v1024_v49  ;;  %v2386_v53 = vsub.f32 %v2240_v21, %v1065_v55 }
 0x28b   : > { %1092 = vmax.xlane.f32.xlu1 %v2343_v23  ;;  %v1160_v37 = vmul.f32 1.442695, %v2386_v53 }
 0x290   : > { %v1027_v29 = vpop.f32.mrf.mxu3  ;;  %v1067_v62 = vpop.xlane.xlu0 %1066 }
 0x291   : > { %v2351_v61 = vadd.f32 %v2154_v28, %v1027_v29  ;;  %v2358_v1 = vsub.f32 %v2250_v32, %v1067_v62 }
 0x293   : > { %1094 = vmax.xlane.f32.xlu2 %v2351_v61  ;;  %v1162_v40 = vmul.f32 1.442695, %v2358_v1 }
 0x297   : > { %v1197_v9 = vpop.xlane.xlu2 %1196 }
 0x298   : > { %1661 = vlog2.f32 %v1197_v9  ;;  %v1030_v5 = vpop.f32.mrf.mxu3  ;;  %v1069_v10 = vpop.xlane.xlu1 %1068 }
 0x299   : > { %v2363_v7 = vadd.f32 %v2154_v28, %v1030_v5  ;;  %1663 = vpow2.f32 %v1158_v3  ;;  %v2371_v32 = vsub.f32 %v2259_v38, %v1069_v10 }
 0x29a   : > { %1665 = vpow2.f32 %v1162_v40 }
 0x29b   : > { %1096 = vmax.xlane.f32.xlu0 %v2363_v7  ;;  %1220 = vadd.xlane.f32.xlu2 %v1660_v11  ;;  %v1164_v48 = vmul.f32 1.442695, %v2371_v32 }
 0x29e   : > { %v1662_v45 = vpop.eup %1661 }
 0x29f   : > { %v1261_v17 = vmul.f32 0.6931472, %v1662_v45  ;;  %v1199_v19 = vpop.xlane.xlu0 %1198  ;;  %v1664_v27 = vpop.eup %1663 }
 0x2a0   : > { %1667 = vlog2.f32 %v1199_v19  ;;  %v1033_v4 = vpop.f32.mrf.mxu3  ;;  %v1666_v38 = vpop.eup %1665 }
 0x2a1   : > { %v1324_v22 = vsub.f32 %v2246_v26, %v1261_v17  ;;  %v2379_v25 = vadd.f32 %v2154_v28, %v1033_v4  ;;  %1669 = vpow2.f32 %v1154_v14  ;;  %v1071_v28 = vpop.xlane.xlu2 %1070 }
 0x2a2   : > { %1671 = vpow2.f32 %v1164_v48  ;;  %v2396_v49 = vsub.f32 %v2267_v44, %v1071_v28 }
 0x2a3   : > { %1356 = vst [vmem:[%s2381_s8] sm:$0xff] %v1324_v22  ;;  %1098 = vmax.xlane.f32.xlu1 %v2379_v25  ;;  %1222 = vadd.xlane.f32.xlu0 %v1664_v27 }
 0x2a4   : > { %1226 = vadd.xlane.f32.xlu2 %v1666_v38 }
 0x2a6   : > { %v1668_v26 = vpop.eup %1667 }
 0x2a7   : > { %v1263_v30 = vmul.f32 0.6931472, %v1668_v26  ;;  %v1201_v36 = vpop.xlane.xlu1 %1200  ;;  %v1670_v39 = vpop.eup %1669 }
 0x2a8   : > { %1673 = vlog2.f32 %v1201_v36  ;;  %v1073_v58 = vpop.xlane.xlu0 %1072  ;;  %v1672_v46 = vpop.eup %1671 }
 0x2a9   : > { %v1325_v42 = vsub.f32 %v2255_v35, %v1263_v30  ;;  %v2391_v63 = vsub.f32 %v2275_v51, %v1073_v58  ;;  %1675 = vpow2.f32 %v1160_v37  ;;  %v1166_v35 = vmul.f32 1.442695, %v2396_v49 }
 0x2ab   : > { %1357 = vst [vmem:[%s2381_s8 + $0x8] sm:$0xff] %v1325_v42  ;;  %v1168_v21 = vmul.f32 1.442695, %v2391_v63  ;;  %1218 = vadd.xlane.f32.xlu1 %v1670_v39  ;;  %1228 = vadd.xlane.f32.xlu0 %v1672_v46 }
 0x2ad   : > { %1677 = vpow2.f32 %v1168_v21 }
 0x2ae   : > { %v1674_v50 = vpop.eup %1673 }
 0x2af   : > { %v1265_v55 = vmul.f32 0.6931472, %v1674_v50  ;;  %v1203_v56 = vpop.xlane.xlu2 %1202  ;;  %v1676_v62 = vpop.eup %1675 }
 0x2b0   : > { %1679 = vlog2.f32 %v1203_v56  ;;  %v1075_v51 = vpop.xlane.xlu1 %1074 }
 0x2b1   : > { %v1326_v29 = vsub.f32 %v2263_v41, %v1265_v55  ;;  %v2401_v59 = vsub.f32 %v2283_v57, %v1075_v51  ;;  %1681 = vpow2.f32 %v1166_v35 }
 0x2b3   : > { %v1678_v9 = vpop.eup %1677  ;;  %1358 = vst [vmem:[%s2381_s8 + $0x10] sm:$0xff] %v1326_v29  ;;  %v1170_v44 = vmul.f32 1.442695, %v2401_v59  ;;  %1224 = vadd.xlane.f32.xlu1 %v1676_v62 }
 0x2b4   : > { %1232 = vadd.xlane.f32.xlu2 %v1678_v9 }
 0x2b5   : > { %1683 = vpow2.f32 %v1170_v44 }
 0x2b6   : > { %v1680_v3 = vpop.eup %1679 }
 0x2b7   : > { %v1267_v5 = vmul.f32 0.6931472, %v1680_v3  ;;  %v1205_v40 = vpop.xlane.xlu0 %1204  ;;  %v1682_v11 = vpop.eup %1681 }
 0x2b8   : > { %1685 = vlog2.f32 %v1205_v40  ;;  %v1077_v10 = vpop.xlane.xlu2 %1076 }
 0x2b9   : > { %v1327_v41 = vsub.f32 %v2271_v47, %v1267_v5  ;;  %v2407_v57 = vsub.f32 %v2291_v0, %v1077_v10 }
 0x2bb   : > { %v1684_v45 = vpop.eup %1683  ;;  %1359 = vst [vmem:[%s2381_s8 + $0x18] sm:$0xff] %v1327_v41  ;;  %v1172_v14 = vmul.f32 1.442695, %v2407_v57  ;;  %1230 = vadd.xlane.f32.xlu1 %v1682_v11 }
 0x2bc   : > { %1234 = vadd.xlane.f32.xlu0 %v1684_v45 }
 0x2bd   : > { %1687 = vpow2.f32 %v1172_v14 }
 0x2be   : > { %v1686_v17 = vpop.eup %1685 }
 0x2bf   : > { %v1269_v19 = vmul.f32 0.6931472, %v1686_v17  ;;  %v1207_v48 = vpop.xlane.xlu1 %1206 }
 0x2c0   : > { %1689 = vlog2.f32 %v1207_v48  ;;  %v1079_v4 = vpop.xlane.xlu0 %1078 }
 0x2c1   : > { %v1328_v47 = vsub.f32 %v2279_v54, %v1269_v19  ;;  %v2413_v0 = vsub.f32 %v2299_v6, %v1079_v4 }
 0x2c3   : > { %v1688_v22 = vpop.eup %1687  ;;  %1360 = vst [vmem:[%s2381_s8 + $0x20] sm:$0xff] %v1328_v47  ;;  %v1174_v27 = vmul.f32 1.442695, %v2413_v0 }
 0x2c4   : > { %1236 = vadd.xlane.f32.xlu1 %v1688_v22 }
 0x2c5   : > { %1691 = vpow2.f32 %v1174_v27 }
 0x2c6   : > { %v1690_v38 = vpop.eup %1689 }
 0x2c7   : > { %v1271_v26 = vmul.f32 0.6931472, %v1690_v38  ;;  %v1209_v30 = vpop.xlane.xlu2 %1208 }
 0x2c8   : > { %1693 = vlog2.f32 %v1209_v30  ;;  %v1081_v28 = vpop.xlane.xlu1 %1080 }
 0x2c9   : > { %v1329_v36 = vsub.f32 %v2287_v60, %v1271_v26  ;;  %v2419_v37 = vsub.f32 %v2307_v12, %v1081_v28 }
 0x2cb   : > { %v1692_v54 = vpop.eup %1691  ;;  %1361 = vst [vmem:[%s2381_s8 + $0x28] sm:$0xff] %v1329_v36  ;;  %v1176_v6 = vmul.f32 1.442695, %v2419_v37 }
 0x2cc   : > { %1238 = vadd.xlane.f32.xlu2 %v1692_v54 }
 0x2cd   : > { %1695 = vpow2.f32 %v1176_v6 }
 0x2ce   : > { %v1694_v58 = vpop.eup %1693 }
 0x2cf   : > { %v1273_v39 = vmul.f32 0.6931472, %v1694_v58  ;;  %v1211_v42 = vpop.xlane.xlu0 %1210 }
 0x2d0   : > { %1697 = vlog2.f32 %v1211_v42  ;;  %v1083_v46 = vpop.xlane.xlu2 %1082 }
 0x2d1   : > { %v1330_v21 = vsub.f32 %v2295_v2, %v1273_v39  ;;  %v2425_v50 = vsub.f32 %v2315_v20, %v1083_v46 }
 0x2d3   : > { %v1696_v60 = vpop.eup %1695  ;;  %1362 = vst [vmem:[%s2381_s8 + $0x30] sm:$0xff] %v1330_v21  ;;  %v1178_v12 = vmul.f32 1.442695, %v2425_v50 }
 0x2d4   : > { %1240 = vadd.xlane.f32.xlu0 %v1696_v60 }
 0x2d5   : > { %1699 = vpow2.f32 %v1178_v12 }
 0x2d6   : > { %v1698_v55 = vpop.eup %1697 }
 0x2d7   : > { %v1275_v56 = vmul.f32 0.6931472, %v1698_v55  ;;  %v1213_v35 = vpop.xlane.xlu1 %1212 }
 0x2d8   : > { %1701 = vlog2.f32 %v1213_v35 }
 0x2d9   : > { %v1331_v51 = vsub.f32 %v2303_v8, %v1275_v56 }
 0x2db   : > { %v1700_v29 = vpop.eup %1699  ;;  %1363 = vst [vmem:[%s2381_s8 + $0x38] sm:$0xff] %v1331_v51 }
 0x2dc   : > { %1242 = vadd.xlane.f32.xlu1 %v1700_v29 }
 0x2de   : > { %v1702_v2 = vpop.eup %1701  ;;  %v1085_v62 = vpop.xlane.xlu0 %1084 }
 0x2df   : > { %v1277_v20 = vmul.f32 0.6931472, %v1702_v2  ;;  %v2432_v9 = vsub.f32 %v2323_v31, %v1085_v62  ;;  %v1215_v44 = vpop.xlane.xlu2 %1214 }
 0x2e0   : > { %1703 = vlog2.f32 %v1215_v44 }
 0x2e1   : > { %v1332_v3 = vsub.f32 %v2311_v16, %v1277_v20  ;;  %v1180_v5 = vmul.f32 1.442695, %v2432_v9 }
 0x2e3   : > { %1364 = vst [vmem:[%s2381_s8 + $0x40] sm:$0xff] %v1332_v3  ;;  %1705 = vpow2.f32 %v1180_v5 }
 0x2e6   : > { %v1704_v40 = vpop.eup %1703  ;;  %v1087_v8 = vpop.xlane.xlu1 %1086 }
 0x2e7   : > { %v1279_v10 = vmul.f32 0.6931472, %v1704_v40  ;;  %v2438_v41 = vsub.f32 %v2331_v13, %v1087_v8  ;;  %v1217_v11 = vpop.xlane.xlu0 %1216 }
 0x2e8   : > { %1707 = vlog2.f32 %v1217_v11 }
 0x2e9   : > { %v1706_v31 = vpop.eup %1705  ;;  %v1333_v45 = vsub.f32 %v2319_v24, %v1279_v10  ;;  %v1182_v14 = vmul.f32 1.442695, %v2438_v41 }
 0x2ea   : > { %1244 = vadd.xlane.f32.xlu2 %v1706_v31 }
 0x2eb   : > { %1365 = vst [vmem:[%s2381_s8 + $0x48] sm:$0xff] %v1333_v45  ;;  %1709 = vpow2.f32 %v1182_v14 }
 0x2ee   : > { %v1708_v16 = vpop.eup %1707  ;;  %v1089_v17 = vpop.xlane.xlu2 %1088 }
 0x2ef   : > { %v1281_v19 = vmul.f32 0.6931472, %v1708_v16  ;;  %v2444_v48 = vsub.f32 %v2335_v43, %v1089_v17 }
 0x2f1   : > { %v1710_v4 = vpop.eup %1709  ;;  %v1334_v13 = vsub.f32 %v2326_v33, %v1281_v19  ;;  %v1184_v47 = vmul.f32 1.442695, %v2444_v48 }
 0x2f2   : > { %1246 = vadd.xlane.f32.xlu0 %v1710_v4 }
 0x2f3   : > { %1366 = vst [vmem:[%s2381_s8 + $0x50] sm:$0xff] %v1334_v13  ;;  %1711 = vpow2.f32 %v1184_v47 }
 0x2f6   : > { %v1091_v24 = vpop.xlane.xlu0 %1090 }
 0x2f7   : > { %v2450_v22 = vsub.f32 %v2339_v18, %v1091_v24 }
 0x2f9   : > { %v1712_v27 = vpop.eup %1711  ;;  %v1186_v38 = vmul.f32 1.442695, %v2450_v22 }
 0x2fa   : > { %1248 = vadd.xlane.f32.xlu1 %v1712_v27 }
 0x2fb   : > { %1713 = vpow2.f32 %v1186_v38 }
 0x2fe   : > { %v1093_v26 = vpop.xlane.xlu1 %1092 }
 0x2ff   : > { %v2454_v43 = vsub.f32 %v2343_v23, %v1093_v26 }
 0x301   : > { %v1714_v30 = vpop.eup %1713  ;;  %v1188_v33 = vmul.f32 1.442695, %v2454_v43 }
 0x302   : > { %1250 = vadd.xlane.f32.xlu2 %v1714_v30 }
 0x303   : > { %1715 = vpow2.f32 %v1188_v33 }
 0x306   : > { %v1095_v28 = vpop.xlane.xlu2 %1094 }
 0x307   : > { %v2458_v36 = vsub.f32 %v2351_v61, %v1095_v28 }
 0x309   : > { %v1716_v18 = vpop.eup %1715  ;;  %v1190_v54 = vmul.f32 1.442695, %v2458_v36 }
 0x30a   : > { %1252 = vadd.xlane.f32.xlu0 %v1716_v18 }
 0x30b   : > { %1717 = vpow2.f32 %v1190_v54 }
 0x30e   : > { %v1221_v6 = vpop.xlane.xlu2 %1220  ;;  %v1097_v58 = vpop.xlane.xlu0 %1096 }
 0x30f   : > { %1719 = vlog2.f32 %v1221_v6  ;;  %v2462_v23 = vsub.f32 %v2363_v7, %v1097_v58 }
 0x311   : > { %v1718_v39 = vpop.eup %1717  ;;  %v1192_v42 = vmul.f32 1.442695, %v2462_v23 }
 0x312   : > { %1254 = vadd.xlane.f32.xlu1 %v1718_v39 }
 0x313   : > { %1721 = vpow2.f32 %v1192_v42 }
 0x315   : > { %v1720_v46 = vpop.eup %1719 }
 0x316   : > { %v1285_v61 = vmul.f32 0.6931472, %v1720_v46  ;;  %v1099_v21 = vpop.xlane.xlu1 %1098  ;;  %v1223_v60 = vpop.xlane.xlu0 %1222 }
 0x317   : > { %v2466_v12 = vsub.f32 %v2379_v25, %v1099_v21  ;;  %v1227_v55 = vpop.xlane.xlu2 %1226  ;;  %1723 = vlog2.f32 %v1223_v60 }
 0x318   : > { %v1336_v56 = vsub.f32 %v2347_v52, %v1285_v61  ;;  %1725 = vlog2.f32 %v1227_v55 }
 0x319   : > { %v1722_v7 = vpop.eup %1721  ;;  %v1194_v35 = vmul.f32 1.442695, %v2466_v12 }
 0x31a   : > { %1368 = vst [vmem:[%s2381_s8 + $0x60] sm:$0xff] %v1336_v56  ;;  %1256 = vadd.xlane.f32.xlu2 %v1722_v7 }
 0x31b   : > { %1727 = vpow2.f32 %v1194_v35 }
 0x31d   : > { %v1724_v51 = vpop.eup %1723 }
 0x31e   : > { %v1726_v29 = vpop.eup %1725  ;;  %v1287_v2 = vmul.f32 0.6931472, %v1724_v51  ;;  %v1219_v62 = vpop.xlane.xlu1 %1218 }
 0x31f   : > { %v1229_v20 = vpop.xlane.xlu0 %1228  ;;  %v1291_v25 = vmul.f32 0.6931472, %v1726_v29  ;;  %1729 = vlog2.f32 %v1219_v62 }
 0x320   : > { %v1337_v44 = vsub.f32 %v2355_v34, %v1287_v2  ;;  %1731 = vlog2.f32 %v1229_v20 }
 0x321   : > { %v1728_v52 = vpop.eup %1727  ;;  %v1339_v3 = vsub.f32 %v2358_v1, %v1291_v25 }
 0x322   : > { %1369 = vst [vmem:[%s2381_s8 + $0x68] sm:$0xff] %v1337_v44  ;;  %1258 = vadd.xlane.f32.xlu0 %v1728_v52 }
 0x323   : > { %1371 = vst [vmem:[%s2381_s8 + $0x78] sm:$0xff] %v1339_v3 }
 0x325   : > { %v1730_v5 = vpop.eup %1729 }
 0x326   : > { %v1732_v40 = vpop.eup %1731  ;;  %v1283_v8 = vmul.f32 0.6931472, %v1730_v5  ;;  %v1225_v10 = vpop.xlane.xlu1 %1224 }
 0x327   : > { %v1293_v11 = vmul.f32 0.6931472, %v1732_v40  ;;  %1733 = vlog2.f32 %v1225_v10  ;;  %v1233_v31 = vpop.xlane.xlu2 %1232 }
 0x328   : > { %v1335_v45 = vsub.f32 %v2367_v15, %v1283_v8  ;;  %1735 = vlog2.f32 %v1233_v31 }
 0x329   : > { %v1340_v34 = vsub.f32 %v2371_v32, %v1293_v11 }
 0x32a   : > { %1367 = vst [vmem:[%s2381_s8 + $0x58] sm:$0xff] %v1335_v45 }
 0x32b   : > { %1372 = vst [vmem:[%s2381_s8 + $0x80] sm:$0xff] %v1340_v34 }
 0x32d   : > { %v1734_v1 = vpop.eup %1733 }
 0x32e   : > { %v1736_v14 = vpop.eup %1735  ;;  %v1289_v16 = vmul.f32 0.6931472, %v1734_v1  ;;  %v1231_v17 = vpop.xlane.xlu1 %1230 }
 0x32f   : > { %v1297_v19 = vmul.f32 0.6931472, %v1736_v14  ;;  %1737 = vlog2.f32 %v1231_v17  ;;  %v1235_v4 = vpop.xlane.xlu0 %1234 }
 0x330   : > { %v1338_v13 = vsub.f32 %v2386_v53, %v1289_v16  ;;  %1739 = vlog2.f32 %v1235_v4 }
 0x331   : > { %v1342_v15 = vsub.f32 %v2391_v63, %v1297_v19 }
 0x332   : > { %1370 = vst [vmem:[%s2381_s8 + $0x70] sm:$0xff] %v1338_v13 }
 0x333   : > { %1374 = vst [vmem:[%s2381_s8 + $0x90] sm:$0xff] %v1342_v15 }
 0x335   : > { %v1738_v32 = vpop.eup %1737 }
 0x336   : > { %v1740_v47 = vpop.eup %1739  ;;  %v1295_v24 = vmul.f32 0.6931472, %v1738_v32 }
 0x337   : > { %v1299_v27 = vmul.f32 0.6931472, %v1740_v47  ;;  %v1237_v38 = vpop.xlane.xlu1 %1236 }
 0x338   : > { %v1341_v26 = vsub.f32 %v2396_v49, %v1295_v24  ;;  %1741 = vlog2.f32 %v1237_v38 }
 0x339   : > { %v1343_v30 = vsub.f32 %v2401_v59, %v1299_v27 }
 0x33a   : > { %1373 = vst [vmem:[%s2381_s8 + $0x88] sm:$0xff] %v1341_v26 }
 0x33b   : > { %1375 = vst [vmem:[%s2381_s8 + $0x98] sm:$0xff] %v1343_v30 }
 0x33e   : > { %v1742_v53 = vpop.eup %1741 }
 0x33f   : > { %v1301_v33 = vmul.f32 0.6931472, %v1742_v53  ;;  %v1239_v63 = vpop.xlane.xlu2 %1238 }
 0x340   : > { %1743 = vlog2.f32 %v1239_v63 }
 0x341   : > { %v1344_v28 = vsub.f32 %v2407_v57, %v1301_v33 }
 0x343   : > { %1376 = vst [vmem:[%s2381_s8 + $0xa0] sm:$0xff] %v1344_v28 }
 0x346   : > { %v1744_v18 = vpop.eup %1743 }
 0x347   : > { %v1303_v54 = vmul.f32 0.6931472, %v1744_v18  ;;  %v1241_v6 = vpop.xlane.xlu0 %1240 }
 0x348   : > { %1745 = vlog2.f32 %v1241_v6 }
 0x349   : > { %v1345_v49 = vsub.f32 %v2413_v0, %v1303_v54 }
 0x34b   : > { %1377 = vst [vmem:[%s2381_s8 + $0xa8] sm:$0xff] %v1345_v49 }
 0x34e   : > { %v1746_v58 = vpop.eup %1745 }
 0x34f   : > { %v1305_v59 = vmul.f32 0.6931472, %v1746_v58  ;;  %v1243_v39 = vpop.xlane.xlu1 %1242 }
 0x350   : > { %1747 = vlog2.f32 %v1243_v39 }
 0x351   : > { %v1346_v42 = vsub.f32 %v2419_v37, %v1305_v59 }
 0x353   : > { %1378 = vst [vmem:[%s2381_s8 + $0xb0] sm:$0xff] %v1346_v42 }
 0x356   : > { %v1748_v46 = vpop.eup %1747 }
 0x357   : > { %v1307_v61 = vmul.f32 0.6931472, %v1748_v46 }
 0x359   : > { %v1347_v57 = vsub.f32 %v2425_v50, %v1307_v61 }
 0x35b   : > { %1379 = vst [vmem:[%s2381_s8 + $0xb8] sm:$0xff] %v1347_v57 }
 0x35d   : > { %v1245_v21 = vpop.xlane.xlu2 %1244 }
 0x35e   : > { %1749 = vlog2.f32 %v1245_v21 }
 0x364   : > { %v1750_v60 = vpop.eup %1749 }
 0x365   : > { %v1309_v55 = vmul.f32 0.6931472, %v1750_v60  ;;  %v1247_v0 = vpop.xlane.xlu0 %1246 }
 0x366   : > { %1751 = vlog2.f32 %v1247_v0 }
 0x367   : > { %v1348_v56 = vsub.f32 %v2432_v9, %v1309_v55 }
 0x369   : > { %1380 = vst [vmem:[%s2381_s8 + $0xc0] sm:$0xff] %v1348_v56 }
 0x36c   : > { %v1752_v7 = vpop.eup %1751 }
 0x36d   : > { %v1311_v35 = vmul.f32 0.6931472, %v1752_v7  ;;  %v1249_v37 = vpop.xlane.xlu1 %1248 }
 0x36e   : > { %1753 = vlog2.f32 %v1249_v37 }
 0x36f   : > { %v1349_v51 = vsub.f32 %v2438_v41, %v1311_v35 }
 0x371   : > { %1381 = vst [vmem:[%s2381_s8 + $0xc8] sm:$0xff] %v1349_v51 }
 0x374   : > { %v1754_v50 = vpop.eup %1753 }
 0x375   : > { %v1313_v29 = vmul.f32 0.6931472, %v1754_v50  ;;  %v1251_v2 = vpop.xlane.xlu2 %1250 }
 0x376   : > { %1755 = vlog2.f32 %v1251_v2 }
 0x377   : > { %v1350_v62 = vsub.f32 %v2444_v48, %v1313_v29 }
 0x379   : > { %1382 = vst [vmem:[%s2381_s8 + $0xd0] sm:$0xff] %v1350_v62 }
 0x37c   : > { %v1756_v20 = vpop.eup %1755 }
 0x37d   : > { %v1315_v25 = vmul.f32 0.6931472, %v1756_v20  ;;  %v1253_v9 = vpop.xlane.xlu0 %1252 }
 0x37e   : > { %1757 = vlog2.f32 %v1253_v9 }
 0x37f   : > { %v1351_v44 = vsub.f32 %v2450_v22, %v1315_v25 }
 0x381   : > { %1383 = vst [vmem:[%s2381_s8 + $0xd8] sm:$0xff] %v1351_v44 }
 0x384   : > { %v1758_v52 = vpop.eup %1757 }
 0x385   : > { %v1317_v41 = vmul.f32 0.6931472, %v1758_v52  ;;  %v1255_v3 = vpop.xlane.xlu1 %1254 }
 0x386   : > { %1759 = vlog2.f32 %v1255_v3 }
 0x387   : > { %v1352_v5 = vsub.f32 %v2454_v43, %v1317_v41 }
 0x389   : > { %1384 = vst [vmem:[%s2381_s8 + $0xe0] sm:$0xff] %v1352_v5 }
 0x38c   : > { %v1760_v48 = vpop.eup %1759 }
 0x38d   : > { %v1319_v40 = vmul.f32 0.6931472, %v1760_v48  ;;  %v1257_v8 = vpop.xlane.xlu2 %1256 }
 0x38e   : > { %1761 = vlog2.f32 %v1257_v8 }
 0x38f   : > { %v1353_v10 = vsub.f32 %v2458_v36, %v1319_v40 }
 0x391   : > { %1385 = vst [vmem:[%s2381_s8 + $0xe8] sm:$0xff] %v1353_v10 }
 0x394   : > { %v1762_v22 = vpop.eup %1761 }
 0x395   : > { %v1321_v11 = vmul.f32 0.6931472, %v1762_v22  ;;  %v1259_v31 = vpop.xlane.xlu0 %1258 }
 0x396   : > { %1763 = vlog2.f32 %v1259_v31 }
 0x397   : > { %v1354_v45 = vsub.f32 %v2462_v23, %v1321_v11 }
 0x399   : > { %1386 = vst [vmem:[%s2381_s8 + $0xf0] sm:$0xff] %v1354_v45 }
 0x39c   : > { %v1764_v43 = vpop.eup %1763 }
 0x39d   : > { %v1323_v36 = vmul.f32 0.6931472, %v1764_v43 }
 0x39f   : > { %v1355_v34 = vsub.f32 %v2466_v12, %v1323_v36 }
 0x3a1   : > { %1387 = vst [vmem:[%s2381_s8 + $0xf8] sm:$0xff] %v1355_v34 }
 0x3a2   : > { %1792 = shalt.err (!%p1789_p3)
}
 0x3a3   : > { %s1829_s19 = smov 128   ;;  %s1830_s8 = smov 8  }
 0x3a4   : > { %1593 = dma.vmem_to_hbm [thread:$0]  (%p1909_p5), %s1402_s9, 4096, %s1404_s13, %s1389_s28, %s1829_s19, %s1829_s19, %s1830_s8  }
 0x3a5 PF: > { %p1599_p4 = scmp.ge.s32.totalorder %s1827_s27, 2  ;;  %s1418_s22 = sand.u32 1, %s1815_s24  }
 0x3a6   : > { %s1419_s23 = scalar_lea.sflag [#allocation3], %s1418_s22 }
 0x3a7   : > { %p1596_p7 = pnand %p1599_p4, %p1913_p6 }
 0x3a9   : > { %p1597_p8 = pneg %p1596_p7 }
 0x3ab   : > { %1810 = dma.done.wait (%p1597_p8), %s1419_s23, 4096  }
 0x3ac   : > { %1812 = vsyncadd (%p1597_p8), %s1419_s23, 4294963200  ;;  %p17_p9 = scmp.ge.s32.totalorder %s1896_s30, 4   ;;  %s2555_s24 = smov %s1819_s25 }
 0x3ad   : > { %s2556_s25 = smov %s1823_s26  ;;  %s2557_s26 = smov %s1907_s10 }
 0x3ae   : > { %s2558_s27 = smov %s1896_s30  ;;  %19 = sbr.rel (!%p17_p9) target bundleno = 3 (0x3), region = 83 }
 0x3b3   :  { %1425 = vsyncpa [#allocation3], 1 }
 0x3b4   :  { %1427 = vsyncpa [#allocation3 + $0x1], 1 }

</bundles_post_ra>
